<compile_context>
chip_gen: v6e
topology: v6e:2x2x1
jax: 0.10.0
libtpu: 0.0.40
codegen_flags: <defaults>
</compile_context>

<pallas_src>
import functools

import jax
import jax.numpy as jnp
from jax.experimental import pallas as pl
from jax.experimental.pallas import tpu as pltpu


# Set to jnp.bfloat16 for large/realistic dims: halves MXU passes and weight vreg footprint while
# keeping f32 accumulation. f32 here to match the f32 PyTorch reference bit-for-bit-ish.
MATMUL_DTYPE = jnp.float32

_LANE = 128      # lane-dense feature padding
_SUBLANE = 8     # sublane granularity for the batch dim


def _round_up(x, m):
    return ((x + m - 1) // m) * m


def _decoder_kernel(x_ref, w_ref, p_ref, o_ref, *, douts, eps):
    """Fused decoder chain on one batch tile.

    x_ref: (TILE_B, Dpad)           activation tile (zero-padded features)
    w_ref: (L, Dpad, Dpad)          per-layer weights, pre-transposed (Din, Dout), zero-padded
    p_ref: (L, 8, Dpad)             rows 0/1/2 = bias / gamma / beta (zero-padded), rest zero
    o_ref: (TILE_B, Dpad)           output tile (padded columns are exactly 0)
    """
    x = x_ref[...].astype(jnp.float32)
    dpad = x.shape[-1]
    col = jax.lax.broadcasted_iota(jnp.int32, (1, dpad), 1)

    # Static Python loop -> fully unrolled layer chain; intermediate activation stays on-chip.
    for layer, dout in enumerate(douts):
        w = w_ref[layer]                      # (Dpad, Dpad)
        p = p_ref[layer]                      # (8, Dpad)
        b = p[0:1, :]
        gamma = p[1:2, :]                     # zero in padded columns
        beta = p[2:3, :]

        y = jnp.dot(x.astype(MATMUL_DTYPE), w.astype(MATMUL_DTYPE),
                    preferred_element_type=jnp.float32) + b

        # LayerNorm over the TRUE feature width `dout` (padded columns of y are exactly 0).
        inv_n = 1.0 / float(dout)
        mean = jnp.sum(y, axis=-1, keepdims=True) * inv_n
        mask = col < dout
        centered = jnp.where(mask, y - mean, 0.0)
        var = jnp.sum(centered * centered, axis=-1, keepdims=True) * inv_n
        y_norm = centered * jax.lax.rsqrt(var + eps)

        out = y_norm * gamma + beta           # padded columns -> 0 (gamma/beta zero-padded)
        x = jnp.maximum(out, 0.0)             # ReLU (both intermediate and final activation)
        # Dropout(0.1) on intermediate layers: identity in inference mode.

    o_ref[...] = x.astype(o_ref.dtype)


def init_cluster_decoder_params(dims, key):
    """Mirror ClusterDecoder.__init__ / _init_weight:
       layer i in [0, len(dims)-2]: Linear(dims[i], dims[i+1]) + LayerNorm(dims[i+1]) + ReLU
       (+ Dropout(0.1) for all but the last layer; identity at inference).
       Linear weight ~ N(0, 0.01), bias = 0; LayerNorm weight = 1, bias = 0."""
    params = []
    for idx in range(len(dims) - 1):
        key, sub = jax.random.split(key)
        din, dout = dims[idx], dims[idx + 1]
        # PyTorch stores (dout, din); keep the transposed (din, dout) layout for x @ W.
        w = (0.01 * jax.random.normal(sub, (dout, din), dtype=jnp.float32)).T
        b = jnp.zeros((dout,), dtype=jnp.float32)
        gamma = jnp.ones((dout,), dtype=jnp.float32)
        beta = jnp.zeros((dout,), dtype=jnp.float32)
        params.append((w, b, gamma, beta))
    return params


def _pack_params(dims, params, dpad):
    """Zero-pad weights to (Dpad, Dpad) and pack (bias, gamma, beta) into one (8, Dpad) block."""
    w_list, p_list = [], []
    for (w, b, gamma, beta), din, dout in zip(params, dims[:-1], dims[1:]):
        wp = jnp.zeros((dpad, dpad), jnp.float32).at[:din, :dout].set(w)
        pp = jnp.zeros((8, dpad), jnp.float32)
        pp = pp.at[0, :dout].set(b)
        pp = pp.at[1, :dout].set(gamma)   # zero outside true width -> kills padded columns
        pp = pp.at[2, :dout].set(beta)
        w_list.append(wp)
        p_list.append(pp)
    return jnp.stack(w_list), jnp.stack(p_list)


def cluster_decoder_forward(z, dims, params, *, eps=1e-5, max_tile_b=256):
    """Fused ClusterDecoder forward on TPU via a single pallas_call."""
    B, din = z.shape
    assert din == dims[0]
    num_layers = len(dims) - 1
    dpad = _round_up(max(dims), _LANE)

    w_stack, p_stack = _pack_params(dims, params, dpad)

    # Batch tiling: big lane/sublane-aligned tiles, "parallel" axis (megacore on v7x).
    if B <= max_tile_b:
        tile_b = max(_round_up(B, _SUBLANE), _SUBLANE)
        b_pad = tile_b
    else:
        tile_b = max_tile_b
        b_pad = _round_up(B, tile_b)
    grid = (b_pad // tile_b,)

    z_pad = jnp.zeros((b_pad, dpad), z.dtype).at[:B, :din].set(z)

    kernel = functools.partial(_decoder_kernel, douts=tuple(dims[1:]), eps=eps)
    out_padded = pl.pallas_call(
        kernel,
        out_shape=jax.ShapeDtypeStruct((b_pad, dpad), z.dtype),
        grid=grid,
        in_specs=[
            pl.BlockSpec((tile_b, dpad), lambda i: (i, 0)),              # activation tile
            pl.BlockSpec((num_layers, dpad, dpad), lambda i: (0, 0, 0)),  # weights, resident
            pl.BlockSpec((num_layers, 8, dpad), lambda i: (0, 0, 0)),     # packed b/gamma/beta
        ],
        out_specs=pl.BlockSpec((tile_b, dpad), lambda i: (i, 0)),
        compiler_params=pltpu.CompilerParams(dimension_semantics=("parallel",)),
    )(z_pad, w_stack, p_stack)

    return out_padded[:B, :dims[-1]]


def _reference_forward(z, params, eps=1e-5):
    out = z
    for (w, b, gamma, beta) in params:
        y = out @ w + b
        mean = jnp.mean(y, axis=-1, keepdims=True)
        var = jnp.mean(jnp.square(y - mean), axis=-1, keepdims=True)
        y = (y - mean) / jnp.sqrt(var + eps) * gamma + beta
        out = jnp.maximum(y, 0.0)
    return out


if __name__ == "__main__":
    # dims = [latent, hidden1, hidden2, output]; z has shape (batch, dims[0]).
    dims = [64, 48, 32, 16]
    batch = 8

    key = jax.random.PRNGKey(0)
    key, zkey = jax.random.split(key)
    z = jax.random.normal(zkey, (batch, dims[0]), dtype=jnp.float32)

    params = init_cluster_decoder_params(dims, key)

    out = cluster_decoder_forward(z, dims, params)
    out = jax.block_until_ready(out)

    ref = _reference_forward(z, params)
    assert out.shape == (batch, dims[-1])
    assert jnp.allclose(out, ref, atol=1e-4, rtol=1e-4), float(jnp.max(jnp.abs(out - ref)))

    print("KERNEL_OK")
</pallas_src>

<mosaic_0001>
module attributes {stable_mosaic.version = 11 : i64} {
  func.func @_decoder_kernel(%arg0: i32, %arg1: memref<8x128xf32, #tpu.memory_space<vmem>>, %arg2: memref<3x128x128xf32, #tpu.memory_space<vmem>>, %arg3: memref<3x8x128xf32, #tpu.memory_space<vmem>>, %arg4: memref<8x128xf32, #tpu.memory_space<vmem>>) attributes {dimension_semantics = [#tpu.dimension_semantics<parallel>], iteration_bounds = array<i64: 1>, scalar_prefetch = 0 : i64, scratch_operands = 0 : i64, tpu.core_type = #tpu.core_type<tc>, window_params = [{transform_indices = @transform_0, window_bounds = array<i64: 8, 128>}, {pipeline_mode = #tpu.pipeline_mode<synchronous>, transform_indices = @transform_1, window_bounds = array<i64: 3, 128, 128>}, {pipeline_mode = #tpu.pipeline_mode<synchronous>, transform_indices = @transform_2, window_bounds = array<i64: 3, 8, 128>}, {transform_indices = @transform_3, window_bounds = array<i64: 8, 128>}]} {
    %c0 = arith.constant 0 : index
    %c0_0 = arith.constant 0 : index
    %0 = vector.load %arg1[%c0, %c0_0] : memref<8x128xf32, #tpu.memory_space<vmem>>, vector<8x128xf32>
    %1 = tpu.iota {dimensions = array<i32: 1>} : vector<1x128xi32>
    %c0_1 = arith.constant 0 : index
    %c0_2 = arith.constant 0 : index
    %c0_3 = arith.constant 0 : index
    %2 = vector.load %arg2[%c0_1, %c0_2, %c0_3] : memref<3x128x128xf32, #tpu.memory_space<vmem>>, vector<1x128x128xf32>
    %3 = vector.shape_cast %2 : vector<1x128x128xf32> to vector<128x128xf32>
    %c0_4 = arith.constant 0 : index
    %c0_5 = arith.constant 0 : index
    %c0_6 = arith.constant 0 : index
    %4 = vector.load %arg3[%c0_4, %c0_5, %c0_6] : memref<3x8x128xf32, #tpu.memory_space<vmem>>, vector<1x8x128xf32>
    %5 = vector.shape_cast %4 : vector<1x8x128xf32> to vector<8x128xf32>
    %6 = vector.extract_strided_slice %5 {offsets = [0, 0], sizes = [1, 128], strides = [1, 1]} : vector<8x128xf32> to vector<1x128xf32>
    %7 = vector.extract_strided_slice %5 {offsets = [1, 0], sizes = [1, 128], strides = [1, 1]} : vector<8x128xf32> to vector<1x128xf32>
    %8 = vector.extract_strided_slice %5 {offsets = [2, 0], sizes = [1, 128], strides = [1, 1]} : vector<8x128xf32> to vector<1x128xf32>
    %cst = arith.constant dense<0.000000e+00> : vector<8x128xf32>
    %9 = tpu.matmul %0, %3, %cst {dimension_numbers = #tpu.dot_dimension_numbers<[1], [0], [0], [1], [0, 0, 1, 1], [], []>} : vector<8x128xf32>, vector<128x128xf32>, vector<8x128xf32> -> vector<8x128xf32>
    %10 = vector.broadcast %6 : vector<1x128xf32> to vector<8x128xf32>
    %11 = arith.addf %9, %10 : vector<8x128xf32>
    %cst_7 = arith.constant dense<0.000000e+00> : vector<8xf32>
    %12 = vector.multi_reduction <add>, %11, %cst_7 [1] : vector<8x128xf32> to vector<8xf32>
    %13 = vector.shape_cast %12 : vector<8xf32> to vector<8x1xf32>
    %cst_8 = arith.constant 0.020833334 : f32
    %14 = vector.broadcast %cst_8 : f32 to vector<8x1xf32>
    %15 = arith.mulf %13, %14 : vector<8x1xf32>
    %c48_i32 = arith.constant 48 : i32
    %16 = vector.broadcast %c48_i32 : i32 to vector<1x128xi32>
    %17 = arith.cmpi slt, %1, %16 : vector<1x128xi32>
    %18 = vector.broadcast %15 : vector<8x1xf32> to vector<8x128xf32>
    %19 = arith.subf %11, %18 : vector<8x128xf32>
    %cst_9 = arith.constant 0.000000e+00 : f32
    %20 = vector.shape_cast %17 : vector<1x128xi1> to vector<1x128xi1>
    %21 = vector.broadcast %20 : vector<1x128xi1> to vector<8x128xi1>
    %22 = vector.broadcast %cst_9 : f32 to vector<8x128xf32>
    %23 = arith.select %21, %19, %22 : vector<8x128xi1>, vector<8x128xf32>
    %24 = arith.mulf %23, %23 : vector<8x128xf32>
    %cst_10 = arith.constant dense<0.000000e+00> : vector<8xf32>
    %25 = vector.multi_reduction <add>, %24, %cst_10 [1] : vector<8x128xf32> to vector<8xf32>
    %26 = vector.shape_cast %25 : vector<8xf32> to vector<8x1xf32>
    %cst_11 = arith.constant 0.020833334 : f32
    %27 = vector.broadcast %cst_11 : f32 to vector<8x1xf32>
    %28 = arith.mulf %26, %27 : vector<8x1xf32>
    %cst_12 = arith.constant 9.99999974E-6 : f32
    %29 = vector.broadcast %cst_12 : f32 to vector<8x1xf32>
    %30 = arith.addf %28, %29 : vector<8x1xf32>
    %31 = math.rsqrt %30 : vector<8x1xf32>
    %32 = vector.broadcast %31 : vector<8x1xf32> to vector<8x128xf32>
    %33 = arith.mulf %23, %32 : vector<8x128xf32>
    %34 = vector.broadcast %7 : vector<1x128xf32> to vector<8x128xf32>
    %35 = arith.mulf %33, %34 : vector<8x128xf32>
    %36 = vector.broadcast %8 : vector<1x128xf32> to vector<8x128xf32>
    %37 = arith.addf %35, %36 : vector<8x128xf32>
    %cst_13 = arith.constant 0.000000e+00 : f32
    %38 = vector.broadcast %cst_13 : f32 to vector<8x128xf32>
    %39 = arith.maximumf %37, %38 : vector<8x128xf32>
    %c1 = arith.constant 1 : index
    %c0_14 = arith.constant 0 : index
    %c0_15 = arith.constant 0 : index
    %40 = vector.load %arg2[%c1, %c0_14, %c0_15] : memref<3x128x128xf32, #tpu.memory_space<vmem>>, vector<1x128x128xf32>
    %41 = vector.shape_cast %40 : vector<1x128x128xf32> to vector<128x128xf32>
    %c1_16 = arith.constant 1 : index
    %c0_17 = arith.constant 0 : index
    %c0_18 = arith.constant 0 : index
    %42 = vector.load %arg3[%c1_16, %c0_17, %c0_18] : memref<3x8x128xf32, #tpu.memory_space<vmem>>, vector<1x8x128xf32>
    %43 = vector.shape_cast %42 : vector<1x8x128xf32> to vector<8x128xf32>
    %44 = vector.extract_strided_slice %43 {offsets = [0, 0], sizes = [1, 128], strides = [1, 1]} : vector<8x128xf32> to vector<1x128xf32>
    %45 = vector.extract_strided_slice %43 {offsets = [1, 0], sizes = [1, 128], strides = [1, 1]} : vector<8x128xf32> to vector<1x128xf32>
    %46 = vector.extract_strided_slice %43 {offsets = [2, 0], sizes = [1, 128], strides = [1, 1]} : vector<8x128xf32> to vector<1x128xf32>
    %cst_19 = arith.constant dense<0.000000e+00> : vector<8x128xf32>
    %47 = tpu.matmul %39, %41, %cst_19 {dimension_numbers = #tpu.dot_dimension_numbers<[1], [0], [0], [1], [0, 0, 1, 1], [], []>} : vector<8x128xf32>, vector<128x128xf32>, vector<8x128xf32> -> vector<8x128xf32>
    %48 = vector.broadcast %44 : vector<1x128xf32> to vector<8x128xf32>
    %49 = arith.addf %47, %48 : vector<8x128xf32>
    %cst_20 = arith.constant dense<0.000000e+00> : vector<8xf32>
    %50 = vector.multi_reduction <add>, %49, %cst_20 [1] : vector<8x128xf32> to vector<8xf32>
    %51 = vector.shape_cast %50 : vector<8xf32> to vector<8x1xf32>
    %cst_21 = arith.constant 3.125000e-02 : f32
    %52 = vector.broadcast %cst_21 : f32 to vector<8x1xf32>
    %53 = arith.mulf %51, %52 : vector<8x1xf32>
    %c32_i32 = arith.constant 32 : i32
    %54 = vector.broadcast %c32_i32 : i32 to vector<1x128xi32>
    %55 = arith.cmpi slt, %1, %54 : vector<1x128xi32>
    %56 = vector.broadcast %53 : vector<8x1xf32> to vector<8x128xf32>
    %57 = arith.subf %49, %56 : vector<8x128xf32>
    %cst_22 = arith.constant 0.000000e+00 : f32
    %58 = vector.shape_cast %55 : vector<1x128xi1> to vector<1x128xi1>
    %59 = vector.broadcast %58 : vector<1x128xi1> to vector<8x128xi1>
    %60 = vector.broadcast %cst_22 : f32 to vector<8x128xf32>
    %61 = arith.select %59, %57, %60 : vector<8x128xi1>, vector<8x128xf32>
    %62 = arith.mulf %61, %61 : vector<8x128xf32>
    %cst_23 = arith.constant dense<0.000000e+00> : vector<8xf32>
    %63 = vector.multi_reduction <add>, %62, %cst_23 [1] : vector<8x128xf32> to vector<8xf32>
    %64 = vector.shape_cast %63 : vector<8xf32> to vector<8x1xf32>
    %cst_24 = arith.constant 3.125000e-02 : f32
    %65 = vector.broadcast %cst_24 : f32 to vector<8x1xf32>
    %66 = arith.mulf %64, %65 : vector<8x1xf32>
    %cst_25 = arith.constant 9.99999974E-6 : f32
    %67 = vector.broadcast %cst_25 : f32 to vector<8x1xf32>
    %68 = arith.addf %66, %67 : vector<8x1xf32>
    %69 = math.rsqrt %68 : vector<8x1xf32>
    %70 = vector.broadcast %69 : vector<8x1xf32> to vector<8x128xf32>
    %71 = arith.mulf %61, %70 : vector<8x128xf32>
    %72 = vector.broadcast %45 : vector<1x128xf32> to vector<8x128xf32>
    %73 = arith.mulf %71, %72 : vector<8x128xf32>
    %74 = vector.broadcast %46 : vector<1x128xf32> to vector<8x128xf32>
    %75 = arith.addf %73, %74 : vector<8x128xf32>
    %cst_26 = arith.constant 0.000000e+00 : f32
    %76 = vector.broadcast %cst_26 : f32 to vector<8x128xf32>
    %77 = arith.maximumf %75, %76 : vector<8x128xf32>
    %c2 = arith.constant 2 : index
    %c0_27 = arith.constant 0 : index
    %c0_28 = arith.constant 0 : index
    %78 = vector.load %arg2[%c2, %c0_27, %c0_28] : memref<3x128x128xf32, #tpu.memory_space<vmem>>, vector<1x128x128xf32>
    %79 = vector.shape_cast %78 : vector<1x128x128xf32> to vector<128x128xf32>
    %c2_29 = arith.constant 2 : index
    %c0_30 = arith.constant 0 : index
    %c0_31 = arith.constant 0 : index
    %80 = vector.load %arg3[%c2_29, %c0_30, %c0_31] : memref<3x8x128xf32, #tpu.memory_space<vmem>>, vector<1x8x128xf32>
    %81 = vector.shape_cast %80 : vector<1x8x128xf32> to vector<8x128xf32>
    %82 = vector.extract_strided_slice %81 {offsets = [0, 0], sizes = [1, 128], strides = [1, 1]} : vector<8x128xf32> to vector<1x128xf32>
    %83 = vector.extract_strided_slice %81 {offsets = [1, 0], sizes = [1, 128], strides = [1, 1]} : vector<8x128xf32> to vector<1x128xf32>
    %84 = vector.extract_strided_slice %81 {offsets = [2, 0], sizes = [1, 128], strides = [1, 1]} : vector<8x128xf32> to vector<1x128xf32>
    %cst_32 = arith.constant dense<0.000000e+00> : vector<8x128xf32>
    %85 = tpu.matmul %77, %79, %cst_32 {dimension_numbers = #tpu.dot_dimension_numbers<[1], [0], [0], [1], [0, 0, 1, 1], [], []>} : vector<8x128xf32>, vector<128x128xf32>, vector<8x128xf32> -> vector<8x128xf32>
    %86 = vector.broadcast %82 : vector<1x128xf32> to vector<8x128xf32>
    %87 = arith.addf %85, %86 : vector<8x128xf32>
    %cst_33 = arith.constant dense<0.000000e+00> : vector<8xf32>
    %88 = vector.multi_reduction <add>, %87, %cst_33 [1] : vector<8x128xf32> to vector<8xf32>
    %89 = vector.shape_cast %88 : vector<8xf32> to vector<8x1xf32>
    %cst_34 = arith.constant 6.250000e-02 : f32
    %90 = vector.broadcast %cst_34 : f32 to vector<8x1xf32>
    %91 = arith.mulf %89, %90 : vector<8x1xf32>
    %c16_i32 = arith.constant 16 : i32
    %92 = vector.broadcast %c16_i32 : i32 to vector<1x128xi32>
    %93 = arith.cmpi slt, %1, %92 : vector<1x128xi32>
    %94 = vector.broadcast %91 : vector<8x1xf32> to vector<8x128xf32>
    %95 = arith.subf %87, %94 : vector<8x128xf32>
    %cst_35 = arith.constant 0.000000e+00 : f32
    %96 = vector.shape_cast %93 : vector<1x128xi1> to vector<1x128xi1>
    %97 = vector.broadcast %96 : vector<1x128xi1> to vector<8x128xi1>
    %98 = vector.broadcast %cst_35 : f32 to vector<8x128xf32>
    %99 = arith.select %97, %95, %98 : vector<8x128xi1>, vector<8x128xf32>
    %100 = arith.mulf %99, %99 : vector<8x128xf32>
    %cst_36 = arith.constant dense<0.000000e+00> : vector<8xf32>
    %101 = vector.multi_reduction <add>, %100, %cst_36 [1] : vector<8x128xf32> to vector<8xf32>
    %102 = vector.shape_cast %101 : vector<8xf32> to vector<8x1xf32>
    %cst_37 = arith.constant 6.250000e-02 : f32
    %103 = vector.broadcast %cst_37 : f32 to vector<8x1xf32>
    %104 = arith.mulf %102, %103 : vector<8x1xf32>
    %cst_38 = arith.constant 9.99999974E-6 : f32
    %105 = vector.broadcast %cst_38 : f32 to vector<8x1xf32>
    %106 = arith.addf %104, %105 : vector<8x1xf32>
    %107 = math.rsqrt %106 : vector<8x1xf32>
    %108 = vector.broadcast %107 : vector<8x1xf32> to vector<8x128xf32>
    %109 = arith.mulf %99, %108 : vector<8x128xf32>
    %110 = vector.broadcast %83 : vector<1x128xf32> to vector<8x128xf32>
    %111 = arith.mulf %109, %110 : vector<8x128xf32>
    %112 = vector.broadcast %84 : vector<1x128xf32> to vector<8x128xf32>
    %113 = arith.addf %111, %112 : vector<8x128xf32>
    %cst_39 = arith.constant 0.000000e+00 : f32
    %114 = vector.broadcast %cst_39 : f32 to vector<8x128xf32>
    %115 = arith.maximumf %113, %114 : vector<8x128xf32>
    %c0_40 = arith.constant 0 : index
    %c0_41 = arith.constant 0 : index
    %116 = vector.load %arg4[%c0_40, %c0_41] : memref<8x128xf32, #tpu.memory_space<vmem>>, vector<8x128xf32>
    tpu.vector_store %arg4[%c0_40, %c0_41], %115 {strides = array<i32>} : memref<8x128xf32, #tpu.memory_space<vmem>>, vector<8x128xf32>,
    return
  }
  func.func @transform_0(%arg0: i32) -> (i32, i32) {
    %c0_i32 = arith.constant 0 : i32
    %c0_i32_0 = arith.constant 0 : i32
    return %arg0, %c0_i32 : i32, i32
  }
  func.func @transform_1(%arg0: i32) -> (i32, i32, i32) {
    %c0_i32 = arith.constant 0 : i32
    %c0_i32_0 = arith.constant 0 : i32
    %c0_i32_1 = arith.constant 0 : i32
    %c0_i32_2 = arith.constant 0 : i32
    return %c0_i32, %c0_i32_0, %c0_i32_1 : i32, i32, i32
  }
  func.func @transform_2(%arg0: i32) -> (i32, i32, i32) {
    %c0_i32 = arith.constant 0 : i32
    %c0_i32_0 = arith.constant 0 : i32
    %c0_i32_1 = arith.constant 0 : i32
    %c0_i32_2 = arith.constant 0 : i32
    return %c0_i32, %c0_i32_0, %c0_i32_1 : i32, i32, i32
  }
  func.func @transform_3(%arg0: i32) -> (i32, i32) {
    %c0_i32 = arith.constant 0 : i32
    %c0_i32_0 = arith.constant 0 : i32
    return %arg0, %c0_i32 : i32, i32
  }
}

</mosaic_0001>

<bundles_post_ra>
// kernel: tpu_custom_call.1
= control target key start
LH: loop header
LB: loop body
LE: loop exit
PB: predicated region body
PF: predicated region fallthrough
CT: control target
= control target key end

     0   :  { %8 = vsyncpa [#allocation3], 0  ;;  %s814_s0 = inlined_call_operand.hbm [shape: f32[8,128], index: 0, kind: input, shape index: {}]   ;;  %s815_s1 = inlined_call_operand.hbm [shape: f32[3,128,128], index: 1, kind: input, shape index: {}]   ;;  %s816_s2 = inlined_call_operand.hbm [shape: f32[3,8,128], index: 2, kind: input, shape index: {}]   ;;  %s817_s3 = inlined_call_operand.hbm [shape: f32[8,128], index: 3, kind: output, shape index: {}]  }
   0x1   :  { %9 = vsyncpa [#allocation6], 0 }
   0x2   :  { %10 = vsyncpa [#allocation4], 0  ;;  %s685_s12 = smov [#allocation5]  }
   0x3   :  { %s26_s13 = sshll.u32 %s685_s12, 4  ;;  %s27_s13 = int_to_ptr.vmem [resolvable:$true] %s26_s13 }
   0x4   :  { %s607_s14 = scalar_lea.vmem %s27_s13, 6144  ;;  %p612_p1 = scmp.lt.s32.totalorder %s27_s13, %s27_s13 }
   0x5   :  { %p608_p0 = scmp.ne.s32.totalorder %s27_s13, %s607_s14  ;;  %p613_p2 = scmp.lt.s32.totalorder %s607_s14, %s607_s14 }
   0x7   :  { %p614_p3 = por %p613_p2, %p612_p1 }
   0x9   :  { %p615_p4 = pnand %p614_p3, %p608_p0 }
   0xb   :  { %618 = shalt.err (!%p615_p4)
}
   0xc   :  { %s686_s15 = smov 128   ;;  %s687_s16 = smov 8  }
   0xd   :  { %32 = dma.hbm_to_vmem [thread:$0]  %s815_s1, 6144, %s27_s13, [#allocation6], %s686_s15, %s686_s15, %s687_s16  }
   0xe   :  { %s688_s19 = smov [#allocation2]   ;;  %s689_s21 = smov [#allocation7]  }
   0xf   :  { %s17_s20 = sshll.u32 %s688_s19, 4  ;;  %s38_s22 = sshll.u32 %s689_s21, 4  ;;  %s18_s20 = int_to_ptr.vmem [resolvable:$true] %s17_s20  ;;  %s39_s22 = int_to_ptr.vmem [resolvable:$true] %s38_s22 }
  0x10   :  { %s627_s23 = scalar_lea.vmem %s18_s20, 128  ;;  %p632_p6 = scmp.lt.s32.totalorder %s18_s20, %s18_s20 }
  0x11   :  { %p628_p5 = scmp.ne.s32.totalorder %s18_s20, %s627_s23  ;;  %p633_p7 = scmp.lt.s32.totalorder %s627_s23, %s627_s23 }
  0x13   :  { %p634_p8 = por %p633_p7, %p632_p6 }
  0x15   :  { %p635_p9 = pnand %p634_p8, %p628_p5 }
  0x17   :  { %638 = shalt.err (!%p635_p9)
}
  0x18   :  { %20 = dma.hbm_to_vmem [thread:$0]  %s814_s0, 128, %s18_s20, [#allocation3]  }
  0x19   :  { %s647_s26 = scalar_lea.vmem %s39_s22, 384  ;;  %p652_p11 = scmp.lt.s32.totalorder %s39_s22, %s39_s22 }
  0x1a   :  { %p648_p10 = scmp.ne.s32.totalorder %s39_s22, %s647_s26  ;;  %p653_p12 = scmp.lt.s32.totalorder %s647_s26, %s647_s26 }
  0x1c   :  { %p654_p13 = por %p653_p12, %p652_p11 }
  0x1e   :  { %p655_p0 = pnand %p654_p13, %p648_p10 }
  0x20   :  { %658 = shalt.err (!%p655_p0)
}
  0x21   :  { %44 = dma.hbm_to_vmem [thread:$0]  %s816_s2, 384, %s39_s22, [#allocation6], %s686_s15, %s686_s15, %s687_s16  }
  0x22   :  { %679 = dma.done.wait [#allocation3], 128  }
  0x23   :  { %680 = vsyncadd [#allocation3], 4294967168 }
  0x24   :  { %681 = dma.done.wait [#allocation6], 6528  }
  0x25   :  { %682 = vsyncadd [#allocation6], 4294960768  ;;  %v690_v0 = vmov 0.0   ;;  %vm691_vm0 = vmmov 0   ;;  %v72_v1 = vld [vmem:[#allocation5 + $0x78] sm:$0xff]  ;;  %v71_v2 = vld [vmem:[#allocation5 + $0x70] sm:$0xff]  ;;  %v55_v18 = vlaneseq }
  0x26   :  { %480 = vmatprep.subr.mxu0 %v690_v0  ;;  %512 = vmatprep.mubr.msk.f32.mxu0 %vm691_vm0, %v690_v0  ;;  %v70_v3 = vld [vmem:[#allocation5 + $0x68] sm:$0xff]  ;;  %v69_v4 = vld [vmem:[#allocation5 + $0x60] sm:$0xff]  ;;  %v68_v5 = vld [vmem:[#allocation5 + $0x58] sm:$0xff]  ;;  %s692_s0 = smov [#allocation8]  }
  0x27   :  { %515 = vmatprep.subr.mxu1 %v690_v0  ;;  %547 = vmatprep.mubr.msk.f32.mxu1 %vm691_vm0, %v690_v0  ;;  %v67_v6 = vld [vmem:[#allocation5 + $0x50] sm:$0xff]  ;;  %v66_v7 = vld [vmem:[#allocation5 + $0x48] sm:$0xff]  ;;  %v65_v8 = vld [vmem:[#allocation5 + $0x40] sm:$0xff]  ;;  %v746_v19 = vshrl.u32 %v55_v18, 7  ;;  %v758_v29 = vand.u32 127, %v55_v18  ;;  %s419_s2 = sshll.u32 %s692_s0, 4  ;;  %s420_s2 = int_to_ptr.vmem [resolvable:$true] %s419_s2 }
  0x28   :  { %481 = vmatpush3.msra.mxu0 %v72_v1  ;;  %v64_v9 = vld [vmem:[#allocation5 + $0x38] sm:$0xff]  ;;  %v63_v10 = vld [vmem:[#allocation5 + $0x30] sm:$0xff]  ;;  %v62_v11 = vld [vmem:[#allocation5 + $0x28] sm:$0xff]  ;;  %s659_s28 = scalar_lea.vmem %s420_s2, 128  ;;  %p664_p2 = scmp.lt.s32.totalorder %s420_s2, %s420_s2 }
  0x29   :  { %482 = vmatprep.subr.mxu0 %v690_v0  ;;  %v61_v12 = vld [vmem:[#allocation5 + $0x20] sm:$0xff]  ;;  %v60_v13 = vld [vmem:[#allocation5 + $0x18] sm:$0xff]  ;;  %v59_v14 = vld [vmem:[#allocation5 + $0x10] sm:$0xff]  ;;  %v749_v20 = vsub.s32 0, %v746_v19  ;;  %vm151_vm1 = vcmp.lt.s32.totalorder %v758_v29, 48  ;;  %v774_v51 = vsub.s32 1, %v746_v19  ;;  %p660_p1 = scmp.ne.s32.totalorder %s420_s2, %s659_s28  ;;  %p665_p3 = scmp.lt.s32.totalorder %s659_s28, %s659_s28 }
  0x2a   :  { %483 = vmatpush3.msra.mxu0 %v71_v2  ;;  %v58_v15 = vld [vmem:[#allocation5 + $0x8] sm:$0xff]  ;;  %v57_v16 = vld [vmem:[#allocation5] sm:$0xff]  ;;  %v54_v17 = vld [vmem:[#allocation2] sm:$0xff]  ;;  %v777_v52 = vsub.s32 2, %v746_v19  ;;  %vm270_vm2 = vcmp.lt.s32.totalorder %v758_v29, 32  ;;  %vm389_vm3 = vcmp.lt.s32.totalorder %v758_v29, 16 }
  0x2b   :  { %484 = vmatprep.subr.mxu0 %v690_v0  ;;  %v751_v21 = vld [vmem:[#allocation7] sm:$0xff]  ;;  %v190_v26 = vld [vmem:[#allocation5 + $0xf8] sm:$0xff]  ;;  %v189_v27 = vld [vmem:[#allocation5 + $0xf0] sm:$0xff]  ;;  %p666_p4 = por %p665_p3, %p664_p2 }
  0x2c   :  { %485 = vmatpush3.msra.mxu0 %v70_v3  ;;  %v77_v22 = vrot.slane %v751_v21, %v749_v20  ;;  %516 = vmatpush3.msra.mxu1 %v190_v26  ;;  %v188_v28 = vld [vmem:[#allocation5 + $0xe8] sm:$0xff]  ;;  %v187_v35 = vld [vmem:[#allocation5 + $0xe0] sm:$0xff]  ;;  %v186_v36 = vld [vmem:[#allocation5 + $0xd8] sm:$0xff]  ;;  %v166_v53 = vrot.slane %v751_v21, %v774_v51  ;;  %v171_v56 = vrot.slane %v751_v21, %v777_v52 }
  0x2d   :  { %486 = vmatprep.subr.mxu0 %v690_v0  ;;  %517 = vmatprep.subr.mxu1 %v690_v0  ;;  %v185_v37 = vld [vmem:[#allocation5 + $0xd0] sm:$0xff]  ;;  %v184_v38 = vld [vmem:[#allocation5 + $0xc8] sm:$0xff]  ;;  %v183_v39 = vld [vmem:[#allocation5 + $0xc0] sm:$0xff]  ;;  %p667_p5 = pnand %p666_p4, %p660_p1 }
  0x2e   :  { %487 = vmatpush3.msra.mxu0 %v69_v4  ;;  %518 = vmatpush3.msra.mxu1 %v189_v27  ;;  %v182_v40 = vld [vmem:[#allocation5 + $0xb8] sm:$0xff]  ;;  %v181_v41 = vld [vmem:[#allocation5 + $0xb0] sm:$0xff]  ;;  %v180_v42 = vld [vmem:[#allocation5 + $0xa8] sm:$0xff] }
  0x2f   :  { %488 = vmatprep.subr.mxu0 %v690_v0  ;;  %519 = vmatprep.subr.mxu1 %v690_v0  ;;  %v179_v43 = vld [vmem:[#allocation5 + $0xa0] sm:$0xff]  ;;  %v178_v44 = vld [vmem:[#allocation5 + $0x98] sm:$0xff]  ;;  %v177_v45 = vld [vmem:[#allocation5 + $0x90] sm:$0xff] }
  0x30   :  { %489 = vmatpush3.msra.mxu0 %v68_v5  ;;  %520 = vmatpush3.msra.mxu1 %v188_v28  ;;  %v176_v46 = vld [vmem:[#allocation5 + $0x88] sm:$0xff]  ;;  %v175_v47 = vld [vmem:[#allocation5 + $0x80] sm:$0xff]  ;;  %v309_v2 = vld [vmem:[#allocation5 + $0x178] sm:$0xff] }
  0x31   :  { %490 = vmatprep.subr.mxu0 %v690_v0  ;;  %521 = vmatprep.subr.mxu1 %v690_v0  ;;  %v783_v60 = vld [vmem:[#allocation7 + $0x8] sm:$0xff]  ;;  %v308_v3 = vld [vmem:[#allocation5 + $0x170] sm:$0xff]  ;;  %v298_v18 = vld [vmem:[#allocation5 + $0x120] sm:$0xff] }
  0x32   :  { %491 = vmatpush3.msra.mxu0 %v67_v6  ;;  %522 = vmatpush3.msra.mxu1 %v187_v35  ;;  %v196_v61 = vrot.slane %v783_v60, %v749_v20  ;;  %v307_v4 = vld [vmem:[#allocation5 + $0x168] sm:$0xff]  ;;  %v297_v19 = vld [vmem:[#allocation5 + $0x118] sm:$0xff]  ;;  %v296_v21 = vld [vmem:[#allocation5 + $0x110] sm:$0xff]  ;;  %v285_v27 = vrot.slane %v783_v60, %v774_v51 }
  0x33   :  { %492 = vmatprep.subr.mxu0 %v690_v0  ;;  %523 = vmatprep.subr.mxu1 %v690_v0  ;;  %v311_v35 = vld [vmem:[#allocation7 + $0x10] sm:$0xff] }
  0x34   :  { %493 = vmatpush3.msra.mxu0 %v66_v7  ;;  %524 = vmatpush3.msra.mxu1 %v186_v36 }
  0x35   :  { %494 = vmatprep.subr.mxu0 %v690_v0  ;;  %525 = vmatprep.subr.mxu1 %v690_v0 }
  0x36   :  { %495 = vmatpush3.msra.mxu0 %v65_v8  ;;  %526 = vmatpush3.msra.mxu1 %v185_v37 }
  0x37   :  { %496 = vmatprep.subr.mxu0 %v690_v0  ;;  %527 = vmatprep.subr.mxu1 %v690_v0 }
  0x38   :  { %497 = vmatpush3.msra.mxu0 %v64_v9  ;;  %528 = vmatpush3.msra.mxu1 %v184_v38 }
  0x39   :  { %498 = vmatprep.subr.mxu0 %v690_v0  ;;  %529 = vmatprep.subr.mxu1 %v690_v0 }
  0x3a   :  { %499 = vmatpush3.msra.mxu0 %v63_v10  ;;  %530 = vmatpush3.msra.mxu1 %v183_v39  ;;  %v306_v10 = vld [vmem:[#allocation5 + $0x160] sm:$0xff] }
  0x3b   :  { %500 = vmatprep.subr.mxu0 %v690_v0  ;;  %531 = vmatprep.subr.mxu1 %v690_v0 }
  0x3c   :  { %501 = vmatpush3.msra.mxu0 %v62_v11  ;;  %532 = vmatpush3.msra.mxu1 %v182_v40  ;;  %v305_v11 = vld [vmem:[#allocation5 + $0x158] sm:$0xff] }
  0x3d   :  { %502 = vmatprep.subr.mxu0 %v690_v0  ;;  %533 = vmatprep.subr.mxu1 %v690_v0 }
  0x3e   :  { %503 = vmatpush3.msra.mxu0 %v61_v12  ;;  %534 = vmatpush3.msra.mxu1 %v181_v41  ;;  %v304_v12 = vld [vmem:[#allocation5 + $0x150] sm:$0xff] }
  0x3f   :  { %504 = vmatprep.subr.mxu0 %v690_v0  ;;  %535 = vmatprep.subr.mxu1 %v690_v0 }
  0x40   :  { %505 = vmatpush3.msra.mxu0 %v60_v13  ;;  %536 = vmatpush3.msra.mxu1 %v180_v42  ;;  %v303_v13 = vld [vmem:[#allocation5 + $0x148] sm:$0xff] }
  0x41   :  { %506 = vmatprep.subr.mxu0 %v690_v0  ;;  %537 = vmatprep.subr.mxu1 %v690_v0 }
  0x42   :  { %507 = vmatpush3.msra.mxu0 %v59_v14  ;;  %538 = vmatpush3.msra.mxu1 %v179_v43  ;;  %v302_v14 = vld [vmem:[#allocation5 + $0x140] sm:$0xff] }
  0x43   :  { %508 = vmatprep.subr.mxu0 %v690_v0  ;;  %539 = vmatprep.subr.mxu1 %v690_v0 }
  0x44   :  { %509 = vmatpush3.msra.mxu0 %v58_v15  ;;  %540 = vmatpush3.msra.mxu1 %v178_v44  ;;  %v301_v15 = vld [vmem:[#allocation5 + $0x138] sm:$0xff] }
  0x45   :  { %510 = vmatprep.subr.mxu0 %v690_v0  ;;  %541 = vmatprep.subr.mxu1 %v690_v0 }
  0x46   :  { %511 = vmatpush3.msra.mxu0 %v57_v16  ;;  %542 = vmatpush3.msra.mxu1 %v177_v45  ;;  %v300_v16 = vld [vmem:[#allocation5 + $0x130] sm:$0xff] }
  0x47   :  { %513 = vmatmul.mubr.f32.vlgmr.msra.gmra.mxu0 %v54_v17  ;;  %550 = vmatprep.subr.mxu0 %v690_v0  ;;  %v299_v17 = vld [vmem:[#allocation5 + $0x128] sm:$0xff] }
  0x48   :  { %582 = vmatprep.mubr.msk.f32.mxu0 %vm691_vm0, %v690_v0  ;;  %543 = vmatprep.subr.mxu1 %v690_v0 }
  0x49   :  { %544 = vmatpush3.msra.mxu1 %v176_v46  ;;  %551 = vmatpush3.msra.mxu0 %v309_v2 }
  0x4a   :  { %545 = vmatprep.subr.mxu1 %v690_v0  ;;  %552 = vmatprep.subr.mxu0 %v690_v0 }
  0x4b   :  { %546 = vmatpush3.msra.mxu1 %v175_v47  ;;  %553 = vmatpush3.msra.mxu0 %v308_v3  ;;  %v404_v47 = vrot.slane %v311_v35, %v774_v51 }
  0x4c   :  { %554 = vmatprep.subr.mxu0 %v690_v0 }
  0x4d   :  { %555 = vmatpush3.msra.mxu0 %v307_v4 }
  0x4e   :  { %556 = vmatprep.subr.mxu0 %v690_v0 }
  0x4f   :  { %557 = vmatpush3.msra.mxu0 %v306_v10 }
  0x50   :  { %558 = vmatprep.subr.mxu0 %v690_v0 }
  0x51   :  { %559 = vmatpush3.msra.mxu0 %v305_v11 }
  0x52   :  { %560 = vmatprep.subr.mxu0 %v690_v0 }
  0x53   :  { %561 = vmatpush3.msra.mxu0 %v304_v12 }
  0x54   :  { %562 = vmatprep.subr.mxu0 %v690_v0 }
  0x55   :  { %563 = vmatpush3.msra.mxu0 %v303_v13 }
  0x56   :  { %564 = vmatprep.subr.mxu0 %v690_v0 }
  0x57   :  { %565 = vmatpush3.msra.mxu0 %v302_v14 }
  0x58   :  { %566 = vmatprep.subr.mxu0 %v690_v0 }
  0x59   :  { %567 = vmatpush3.msra.mxu0 %v301_v15 }
  0x5a   :  { %568 = vmatprep.subr.mxu0 %v690_v0 }
  0x5b   :  { %569 = vmatpush3.msra.mxu0 %v300_v16 }
  0x5c   :  { %570 = vmatprep.subr.mxu0 %v690_v0 }
  0x5d   :  { %571 = vmatpush3.msra.mxu0 %v299_v17 }
  0x5e   :  { %572 = vmatprep.subr.mxu0 %v690_v0 }
  0x5f   :  { %573 = vmatpush3.msra.mxu0 %v298_v18 }
  0x60   :  { %574 = vmatprep.subr.mxu0 %v690_v0 }
  0x61   :  { %575 = vmatpush3.msra.mxu0 %v297_v19 }
  0x62   :  { %576 = vmatprep.subr.mxu0 %v690_v0 }
  0x63   :  { %577 = vmatpush3.msra.mxu0 %v296_v21 }
  0x64   :  { %578 = vmatprep.subr.mxu0 %v690_v0 }
 0x107   :  { %v144_v23 = vpop.f32.mrf.mxu0 }
 0x108   :  { %v145_v24 = vadd.f32 %v144_v23, %v77_v22  ;;  %v295_v22 = vld [vmem:[#allocation5 + $0x108] sm:$0xff]  ;;  %v294_v23 = vld [vmem:[#allocation5 + $0x100] sm:$0xff] }
 0x109   :  { %v514_v25 = vpop.f32.mrf.mxu0  ;;  %579 = vmatpush3.msra.mxu0 %v295_v22 }
 0x10a   :  { %148 = vadd.xlane.f32.xlu0 %v145_v24  ;;  %580 = vmatprep.subr.mxu0 %v690_v0  ;;  %v315_v0 = vrot.slane %v311_v35, %v749_v20 }
 0x10b   :  { %581 = vmatpush3.msra.mxu0 %v294_v23 }
 0x193   :  { %v149_v30 = vpop.xlane.xlu0 %148 }
 0x194   :  { %v150_v31 = vmul.f32 0.020833334, %v149_v30  ;;  %v290_v30 = vrot.slane %v783_v60, %v777_v52 }
 0x196   :  { %v152_v32 = vsub.f32 %v145_v24, %v150_v31 }
 0x198   :  { %v155_v33 = vsel %vm151_vm1, %v152_v32, 0.0 }
 0x199   :  { %v156_v34 = vmul.f32 %v155_v33, %v155_v33 }
 0x19b   :  { %157 = vadd.xlane.f32.xlu0 %v156_v34 }
 0x224   :  { %v158_v48 = vpop.xlane.xlu0 %157 }
 0x225   :  { %v159_v49 = vmul.f32 0.020833334, %v158_v48 }
 0x227   :  { %v160_v50 = vadd.f32 1e-05, %v159_v49  ;;  %v409_v49 = vrot.slane %v311_v35, %v777_v52 }
 0x229   :  { %593 = vrsqrt.f32 %v160_v50 }
 0x236   :  { %v594_v54 = vpop.eup %593 }
 0x237   :  { %v162_v55 = vmul.f32 %v594_v54, %v155_v33 }
 0x239   :  { %v167_v57 = vmul.f32 %v166_v53, %v162_v55 }
 0x23b   :  { %v172_v58 = vadd.f32 %v171_v56, %v167_v57 }
 0x23d   :  { %v173_v59 = vmax.f32 %v172_v58, 0.0 }
 0x23f   :  { %548 = vmatmul.mubr.f32.vlgmr.msra.gmra.mxu1 %v173_v59 }
 0x2ff   :  { %v263_v62 = vpop.f32.mrf.mxu1 }
 0x300   :  { %v264_v63 = vadd.f32 %v263_v62, %v196_v61 }
 0x301   :  { %v549_v1 = vpop.f32.mrf.mxu1 }
 0x302   :  { %267 = vadd.xlane.f32.xlu1 %v264_v63 }
 0x38b   :  { %v268_v5 = vpop.xlane.xlu1 %267 }
 0x38c   :  { %v269_v6 = vmul.f32 0.03125, %v268_v5 }
 0x38e   :  { %v271_v7 = vsub.f32 %v264_v63, %v269_v6 }
 0x390   :  { %v274_v8 = vsel %vm270_vm2, %v271_v7, 0.0 }
 0x391   :  { %v275_v9 = vmul.f32 %v274_v8, %v274_v8 }
 0x393   :  { %276 = vadd.xlane.f32.xlu1 %v275_v9 }
 0x41c   :  { %v277_v24 = vpop.xlane.xlu1 %276 }
 0x41d   :  { %v278_v25 = vmul.f32 0.03125, %v277_v24 }
 0x41f   :  { %v279_v26 = vadd.f32 1e-05, %v278_v25 }
 0x421   :  { %595 = vrsqrt.f32 %v279_v26 }
 0x42e   :  { %v596_v28 = vpop.eup %595 }
 0x42f   :  { %v281_v31 = vmul.f32 %v596_v28, %v274_v8 }
 0x431   :  { %v286_v32 = vmul.f32 %v285_v27, %v281_v31 }
 0x433   :  { %v291_v33 = vadd.f32 %v290_v30, %v286_v32 }
 0x435   :  { %v292_v34 = vmax.f32 %v291_v33, 0.0 }
 0x437   :  { %583 = vmatmul.mubr.f32.vlgmr.msra.gmra.mxu0 %v292_v34 }
 0x4f7   :  { %v382_v36 = vpop.f32.mrf.mxu0 }
 0x4f8   :  { %v383_v37 = vadd.f32 %v382_v36, %v315_v0 }
 0x4f9   :  { %v584_v38 = vpop.f32.mrf.mxu0 }
 0x4fa   :  { %386 = vadd.xlane.f32.xlu0 %v383_v37 }
 0x583   :  { %v387_v39 = vpop.xlane.xlu0 %386 }
 0x584   :  { %v388_v40 = vmul.f32 0.0625, %v387_v39 }
 0x586   :  { %v390_v41 = vsub.f32 %v383_v37, %v388_v40 }
 0x588   :  { %v393_v42 = vsel %vm389_vm3, %v390_v41, 0.0 }
 0x589   :  { %v394_v43 = vmul.f32 %v393_v42, %v393_v42 }
 0x58b   :  { %395 = vadd.xlane.f32.xlu1 %v394_v43 }
 0x614   :  { %v396_v44 = vpop.xlane.xlu1 %395 }
 0x615   :  { %v397_v45 = vmul.f32 0.0625, %v396_v44 }
 0x617   :  { %v398_v46 = vadd.f32 1e-05, %v397_v45 }
 0x619   :  { %597 = vrsqrt.f32 %v398_v46 }
 0x626   :  { %v598_v48 = vpop.eup %597 }
 0x627   :  { %v400_v20 = vmul.f32 %v598_v48, %v393_v42 }
 0x629   :  { %v405_v50 = vmul.f32 %v404_v47, %v400_v20 }
 0x62b   :  { %v410_v53 = vadd.f32 %v409_v49, %v405_v50 }
 0x62d   :  { %v411_v54 = vmax.f32 %v410_v53, 0.0 }
 0x62f   :  { %412 = vst [vmem:[#allocation8] sm:$0xff] %v411_v54 }
 0x630   :  { %670 = shalt.err (!%p667_p5)
}
 0x631   :  { %422 = dma.vmem_to_hbm [thread:$0]  %s420_s2, 128, %s817_s3, [#allocation4]  }
 0x632   :  { %683 = dma.done.wait [#allocation4], 128  }
 0x633   :  { %684 = vsyncadd [#allocation4], 4294967168 }
 0x634   :  { %426 = vsyncpa [#allocation3], 1 }
 0x635   :  { %427 = vsyncpa [#allocation6], 1 }
 0x636   :  { %428 = vsyncpa [#allocation4], 1 }

</bundles_post_ra>
